<compile_context>
chip_gen: v7x
topology: tpu7x:2x2x1
jax: 0.10.0
libtpu: 0.0.40
codegen_flags: <defaults>
</compile_context>

<pallas_src>
import functools

import jax
import jax.numpy as jnp
from jax import lax
from jax.experimental import pallas as pl
from jax.experimental.pallas import tpu as pltpu


def _ukd_kernel(t_ref, s_ref, v_ref, o_ref, *, tm, g, d, valid_rows, nblocks, spc):
    """One (tm, g*d) tile of packed tokens.

    t_ref, s_ref : (tm, g*d)  teacher / student features, g tokens per row
    v_ref        : (tm, g)    predicted variance, one column per packed token
    o_ref        : (1, 128)   per-split resident running sum (all lanes identical)
    """
    c = pl.program_id(0)        # "parallel" split axis (maps to TensorCores on v7x)
    i = pl.program_id(1)        # "arbitrary" reduction axis

    @pl.when(i == 0)
    def _init():
        o_ref[...] = jnp.zeros_like(o_ref)

    gb = c * spc + i                               # global block id (may overshoot)
    row0 = jnp.minimum(gb, nblocks - 1) * tm       # must match the clamped index_map

    t = t_ref[...].astype(jnp.float32)
    s = s_ref[...].astype(jnp.float32)
    v = v_ref[...].astype(jnp.float32)             # (tm, g)

    diff = t - s
    sq = diff * diff                               # (tm, g*d)

    # Exact per-token (segmented) lane reduction: token j of a packed row
    # occupies lanes [j*d, (j+1)*d).  Static slices + f32 sums keep full
    # precision (no bf16 MXU pass).
    if g == 1:
        mse = jnp.sum(sq, axis=-1, keepdims=True)                      # (tm, 1)
    else:
        mse = jnp.concatenate(
            [jnp.sum(sq[:, j * d:(j + 1) * d], axis=-1, keepdims=True)
             for j in range(g)],
            axis=-1)                                                   # (tm, g)

    var = jnp.maximum(v, 1e-6)                     # clamp(min=1e-6)
    per_token = mse / var + jnp.log(var)           # (tm, g)

    # Mask: packed rows past the real data (ragged tail) and duplicated
    # (clamped) tail grid steps both contribute exactly 0.
    rid = row0 + lax.broadcasted_iota(jnp.int32, (tm, g), 0)
    limit = jnp.where(gb < nblocks, valid_rows, 0)
    per_token = jnp.where(rid < limit, per_token, 0.0)

    # Scalar partial sum broadcast over the whole (1, 128) block (one VPU op).
    o_ref[...] += jnp.sum(per_token)


def ukd_loss(teacher_feat: jax.Array,
             student_feat: jax.Array,
             var_pred: jax.Array,
             *,
             target_block_bytes: int = 4 * 1024 * 1024,
             num_splits: int = 2,
             vmem_limit_bytes: int = 48 * 1024 * 1024) -> jax.Array:
    """teacher_feat, student_feat: (B, T, D); var_pred: (B, T, 1). Returns scalar f32."""
    assert teacher_feat.shape == student_feat.shape
    B, T, D = teacher_feat.shape
    assert var_pred.shape == (B, T, 1)

    M = B * T

    # Lane-pack tokens when D < 128: (M, D) -> (M/g, g*D) is a free row-major
    # reshape (no HBM copy) giving full 128-lane utilisation and dense DMA rows.
    g = 1
    if D < 128 and D >= 8 and 128 % D == 0:
        cand = 128 // D
        if M % cand == 0:
            g = cand
    Dp = g * D
    Mg = M // g

    t2 = teacher_feat.reshape(Mg, Dp)
    s2 = student_feat.reshape(Mg, Dp)
    v2 = var_pred.reshape(Mg, g)

    # Tile rows by bytes (~target_block_bytes per feature block), multiple of 8
    # sublanes; use the full extent when the array is small.
    itemsize = jnp.dtype(teacher_feat.dtype).itemsize
    row_bytes = Dp * itemsize
    tm_target = max(8, (int(target_block_bytes) // row_bytes // 8) * 8)
    if Mg <= tm_target:
        tm = Mg                       # full-extent block (allowed even if % 8 != 0)
        nblocks = 1
    else:
        tm = tm_target
        nblocks = pl.cdiv(Mg, tm)

    num_splits = max(1, min(int(num_splits), nblocks))
    spc = pl.cdiv(nblocks, num_splits)              # blocks per split / core

    def blk_map(c, i):
        # Clamp so trailing padded grid steps never address a fully-OOB block;
        # their contribution is zeroed in-kernel.
        return (jnp.minimum(c * spc + i, nblocks - 1), 0)

    kernel = functools.partial(
        _ukd_kernel, tm=tm, g=g, d=D, valid_rows=Mg, nblocks=nblocks, spc=spc)

    feat_bytes = 2 * M * D * itemsize
    var_bytes = M * jnp.dtype(var_pred.dtype).itemsize
    cost = pl.CostEstimate(
        flops=3 * M * D + 6 * M,
        transcendentals=M,
        bytes_accessed=feat_bytes + var_bytes + 4 * 128 * num_splits,
    )

    out = pl.pallas_call(
        kernel,
        out_shape=jax.ShapeDtypeStruct((1, 128 * num_splits), jnp.float32),
        grid_spec=pltpu.PrefetchScalarGridSpec(
            num_scalar_prefetch=0,
            grid=(num_splits, spc),
            in_specs=[
                pl.BlockSpec((tm, Dp), blk_map),
                pl.BlockSpec((tm, Dp), blk_map),
                pl.BlockSpec((tm, g), blk_map),
            ],
            out_specs=pl.BlockSpec((1, 128), lambda c, i: (0, c)),
        ),
        compiler_params=pltpu.CompilerParams(
            dimension_semantics=("parallel", "arbitrary"),
            vmem_limit_bytes=int(vmem_limit_bytes),
        ),
        cost_estimate=cost,
    )(t2, s2, v2)

    # Every lane of a split's block holds the same running sum -> take lane 0.
    partials = out.reshape(num_splits, 128)[:, 0]
    return jnp.sum(partials) / jnp.float32(M)


def _reference(teacher_feat, student_feat, var_pred):
    var = jnp.maximum(var_pred[..., 0], 1e-6)
    mse = jnp.sum((teacher_feat - student_feat) ** 2, axis=-1)
    return jnp.mean(mse / var + jnp.log(var))


if __name__ == "__main__":
    key = jax.random.PRNGKey(0)

    def make(b, t, d, k):
        k1, k2, k3 = jax.random.split(k, 3)
        teacher = jax.random.normal(k1, (b, t, d), dtype=jnp.float32)
        student = jax.random.normal(k2, (b, t, d), dtype=jnp.float32)
        var = jax.random.uniform(k3, (b, t, 1), dtype=jnp.float32,
                                 minval=0.05, maxval=2.0)
        return teacher, student, var

    cases = [
        # (B, T, D, kwargs) -- tiny block targets force multi-step / multi-split paths
        (2, 8, 32, {}),                                    # single full block, lane-packed (g=4)
        (2, 50, 32, dict(target_block_bytes=4096)),        # 4 blocks over 2 splits, ragged tail
        (2, 5, 32, {}),                                    # M % g != 0 -> unpacked (g=1) path
        (2, 40, 256, dict(target_block_bytes=16384)),      # g=1, clamped duplicate tail block
    ]
    keys = jax.random.split(key, len(cases))
    for (b, t, d, kw), k in zip(cases, keys):
        teacher, student, var = make(b, t, d, k)
        loss = ukd_loss(teacher, student, var, **kw)
        jax.block_until_ready(loss)
        ref = _reference(teacher, student, var)
        assert jnp.allclose(loss, ref, rtol=1e-5, atol=1e-5), (b, t, d, loss, ref)

    print("KERNEL_OK")
</pallas_src>

<mosaic_0001>
module attributes {stable_mosaic.version = 11 : i64} {
  func.func @_ukd_kernel(%arg0: i32, %arg1: i32, %arg2: memref<4x128xf32, #tpu.memory_space<vmem>>, %arg3: memref<4x128xf32, #tpu.memory_space<vmem>>, %arg4: memref<4x4xf32, #tpu.memory_space<vmem>>, %arg5: memref<1x128xf32, #tpu.memory_space<vmem>>) attributes {dimension_semantics = [#tpu.dimension_semantics<parallel>, #tpu.dimension_semantics<arbitrary>], iteration_bounds = array<i64: 1, 1>, scalar_prefetch = 0 : i64, scratch_operands = 0 : i64, tpu.core_type = #tpu.core_type<tc>, window_params = [{transform_indices = @transform_0, window_bounds = array<i64: 4, 128>}, {transform_indices = @transform_1, window_bounds = array<i64: 4, 128>}, {transform_indices = @transform_2, window_bounds = array<i64: 4, 4>}, {transform_indices = @transform_3, window_bounds = array<i64: 1, 128>}]} {
    %c0_i32 = arith.constant 0 : i32
    %0 = arith.cmpi eq, %arg1, %c0_i32 : i32
    %1 = arith.extui %0 : i1 to i32
    %c0_i32_0 = arith.constant 0 : i32
    %2 = arith.cmpi ne, %1, %c0_i32_0 : i32
    scf.if %2 {
      %cst_20 = arith.constant 0.000000e+00 : f32
      %47 = vector.broadcast %cst_20 : f32 to vector<1x128xf32>
      %c0_21 = arith.constant 0 : index
      %c0_22 = arith.constant 0 : index
      %48 = vector.load %arg5[%c0_21, %c0_22] : memref<1x128xf32, #tpu.memory_space<vmem>>, vector<1x128xf32>
      tpu.vector_store %arg5[%c0_21, %c0_22], %47 {strides = array<i32>} : memref<1x128xf32, #tpu.memory_space<vmem>>, vector<1x128xf32>,
    } else {
    }
    %c1_i32 = arith.constant 1 : i32
    %3 = arith.muli %arg0, %c1_i32 : i32
    %4 = arith.addi %3, %arg1 : i32
    %c0_i32_1 = arith.constant 0 : i32
    %5 = arith.minsi %4, %c0_i32_1 : i32
    %c4_i32 = arith.constant 4 : i32
    %6 = arith.muli %5, %c4_i32 : i32
    %c0 = arith.constant 0 : index
    %c0_2 = arith.constant 0 : index
    %7 = vector.load %arg2[%c0, %c0_2] : memref<4x128xf32, #tpu.memory_space<vmem>>, vector<4x128xf32>
    %c0_3 = arith.constant 0 : index
    %c0_4 = arith.constant 0 : index
    %8 = vector.load %arg3[%c0_3, %c0_4] : memref<4x128xf32, #tpu.memory_space<vmem>>, vector<4x128xf32>
    %c0_5 = arith.constant 0 : index
    %c0_6 = arith.constant 0 : index
    %9 = vector.load %arg4[%c0_5, %c0_6] : memref<4x4xf32, #tpu.memory_space<vmem>>, vector<4x4xf32>
    %10 = arith.subf %7, %8 : vector<4x128xf32>
    %11 = arith.mulf %10, %10 : vector<4x128xf32>
    %12 = vector.extract_strided_slice %11 {offsets = [0, 0], sizes = [4, 32], strides = [1, 1]} : vector<4x128xf32> to vector<4x32xf32>
    %cst = arith.constant dense<0.000000e+00> : vector<4xf32>
    %13 = vector.multi_reduction <add>, %12, %cst [1] : vector<4x32xf32> to vector<4xf32>
    %14 = vector.shape_cast %13 : vector<4xf32> to vector<4x1xf32>
    %15 = vector.extract_strided_slice %11 {offsets = [0, 32], sizes = [4, 32], strides = [1, 1]} : vector<4x128xf32> to vector<4x32xf32>
    %cst_7 = arith.constant dense<0.000000e+00> : vector<4xf32>
    %16 = vector.multi_reduction <add>, %15, %cst_7 [1] : vector<4x32xf32> to vector<4xf32>
    %17 = vector.shape_cast %16 : vector<4xf32> to vector<4x1xf32>
    %18 = vector.extract_strided_slice %11 {offsets = [0, 64], sizes = [4, 32], strides = [1, 1]} : vector<4x128xf32> to vector<4x32xf32>
    %cst_8 = arith.constant dense<0.000000e+00> : vector<4xf32>
    %19 = vector.multi_reduction <add>, %18, %cst_8 [1] : vector<4x32xf32> to vector<4xf32>
    %20 = vector.shape_cast %19 : vector<4xf32> to vector<4x1xf32>
    %21 = vector.extract_strided_slice %11 {offsets = [0, 96], sizes = [4, 32], strides = [1, 1]} : vector<4x128xf32> to vector<4x32xf32>
    %cst_9 = arith.constant dense<0.000000e+00> : vector<4xf32>
    %22 = vector.multi_reduction <add>, %21, %cst_9 [1] : vector<4x32xf32> to vector<4xf32>
    %23 = vector.shape_cast %22 : vector<4xf32> to vector<4x1xf32>
    %24 = tpu.concatenate %14, %17, %20, %23 in 1 : vector<4x1xf32>, vector<4x1xf32>, vector<4x1xf32>, vector<4x1xf32> -> vector<4x4xf32>
    %cst_10 = arith.constant 9.99999997E-7 : f32
    %25 = vector.broadcast %cst_10 : f32 to vector<4x4xf32>
    %26 = arith.maximumf %9, %25 : vector<4x4xf32>
    %27 = arith.divf %24, %26 : vector<4x4xf32>
    %28 = math.log %26 : vector<4x4xf32>
    %29 = arith.addf %27, %28 : vector<4x4xf32>
    %30 = tpu.iota {dimensions = array<i32: 0>} : vector<4x4xi32>
    %31 = vector.broadcast %6 : i32 to vector<4x4xi32>
    %32 = arith.addi %31, %30 : vector<4x4xi32>
    %c1_i32_11 = arith.constant 1 : i32
    %33 = arith.cmpi slt, %4, %c1_i32_11 : i32
    %c4_i32_12 = arith.constant 4 : i32
    %c0_i32_13 = arith.constant 0 : i32
    %34 = arith.select %33, %c4_i32_12, %c0_i32_13 : i32
    %35 = vector.broadcast %34 : i32 to vector<4x4xi32>
    %36 = arith.cmpi slt, %32, %35 : vector<4x4xi32>
    %cst_14 = arith.constant 0.000000e+00 : f32
    %37 = vector.broadcast %cst_14 : f32 to vector<4x4xf32>
    %38 = arith.select %36, %29, %37 : vector<4x4xi1>, vector<4x4xf32>
    %c0_15 = arith.constant 0 : index
    %c0_16 = arith.constant 0 : index
    %39 = vector.load %arg5[%c0_15, %c0_16] : memref<1x128xf32, #tpu.memory_space<vmem>>, vector<1x128xf32>
    %40 = vector.shape_cast %38 : vector<4x4xf32> to vector<1x4x4xf32>
    %cst_17 = arith.constant dense<0.000000e+00> : vector<1xf32>
    %41 = vector.multi_reduction <add>, %40, %cst_17 [1, 2] : vector<1x4x4xf32> to vector<1xf32>
    %42 = vector.shape_cast %41 : vector<1xf32> to vector<1x1x1xf32>
    %43 = vector.extract %42[0, 0, 0] : f32 from vector<1x1x1xf32>
    %44 = vector.broadcast %43 : f32 to vector<1x128xf32>
    %45 = arith.addf %39, %44 : vector<1x128xf32>
    %c0_18 = arith.constant 0 : index
    %c0_19 = arith.constant 0 : index
    %46 = vector.load %arg5[%c0_18, %c0_19] : memref<1x128xf32, #tpu.memory_space<vmem>>, vector<1x128xf32>
    tpu.vector_store %arg5[%c0_18, %c0_19], %45 {strides = array<i32>} : memref<1x128xf32, #tpu.memory_space<vmem>>, vector<1x128xf32>,
    return
  }
  func.func @transform_0(%arg0: i32, %arg1: i32) -> (i32, i32) {
    %c1_i32 = arith.constant 1 : i32
    %0 = arith.muli %arg0, %c1_i32 : i32
    %1 = arith.addi %0, %arg1 : i32
    %c0_i32 = arith.constant 0 : i32
    %2 = arith.minsi %1, %c0_i32 : i32
    %c0_i32_0 = arith.constant 0 : i32
    %c0_i32_1 = arith.constant 0 : i32
    return %2, %c0_i32_0 : i32, i32
  }
  func.func @transform_1(%arg0: i32, %arg1: i32) -> (i32, i32) {
    %c1_i32 = arith.constant 1 : i32
    %0 = arith.muli %arg0, %c1_i32 : i32
    %1 = arith.addi %0, %arg1 : i32
    %c0_i32 = arith.constant 0 : i32
    %2 = arith.minsi %1, %c0_i32 : i32
    %c0_i32_0 = arith.constant 0 : i32
    %c0_i32_1 = arith.constant 0 : i32
    return %2, %c0_i32_0 : i32, i32
  }
  func.func @transform_2(%arg0: i32, %arg1: i32) -> (i32, i32) {
    %c1_i32 = arith.constant 1 : i32
    %0 = arith.muli %arg0, %c1_i32 : i32
    %1 = arith.addi %0, %arg1 : i32
    %c0_i32 = arith.constant 0 : i32
    %2 = arith.minsi %1, %c0_i32 : i32
    %c0_i32_0 = arith.constant 0 : i32
    %c0_i32_1 = arith.constant 0 : i32
    return %2, %c0_i32_0 : i32, i32
  }
  func.func @transform_3(%arg0: i32, %arg1: i32) -> (i32, i32) {
    %c0_i32 = arith.constant 0 : i32
    %c0_i32_0 = arith.constant 0 : i32
    return %c0_i32, %arg0 : i32, i32
  }
}

</mosaic_0001>

<bundles_post_ra>
// kernel: tpu_custom_call.1
= control target key start
LH: loop header
LB: loop body
LE: loop exit
PB: predicated region body
PF: predicated region fallthrough
CT: control target
= control target key end

     0   :  { %8 = vsyncpa [#allocation3], 0  ;;  %s332_s0 = inlined_call_operand.hbm [shape: f32[4,128], index: 0, kind: input, shape index: {}]   ;;  %s333_s1 = inlined_call_operand.hbm [shape: f32[4,128], index: 1, kind: input, shape index: {}]   ;;  %s334_s2 = inlined_call_operand.vmem [shape: f32[4,4], index: 2, kind: input, shape index: {}]   ;;  %s335_s3 = inlined_call_operand.hbm [shape: f32[1,128], index: 3, kind: output, shape index: {}]  }
   0x1   :  { %9 = vsyncpa [#allocation6], 0 }
   0x2   :  { %10 = vsyncpa [#allocation4], 0  ;;  %s266_s12 = smov [#allocation2]   ;;  %s267_s14 = smov [#allocation5]  }
   0x3   :  { %s22_s13 = sshll.u32 %s266_s12, 4  ;;  %s37_s15 = sshll.u32 %s267_s14, 4  ;;  %s23_s13 = int_to_ptr.vmem [resolvable:$true] %s22_s13  ;;  %s38_s15 = int_to_ptr.vmem [resolvable:$true] %s37_s15 }
   0x4   :  { %s194_s18 = scalar_lea.hbm %s332_s0, 64 }
   0x5   :  { %p195_p0 = scmp.ne.s32.totalorder %s332_s0, %s194_s18  ;;  %p198_p1 = scmp.lt.u32.totalorder %s194_s18, %s332_s0 }
   0x7   :  { %p200_p2 = pnand %p198_p1, %p195_p0 }
   0x9   :  { %203 = shalt.err (!%p200_p2)
}
   0xa   :  { %s204_s23 = scalar_lea.vmem %s23_s13, 64  ;;  %p209_p4 = scmp.lt.s32.totalorder %s23_s13, %s23_s13 }
   0xb   :  { %p205_p3 = scmp.ne.s32.totalorder %s23_s13, %s204_s23  ;;  %p210_p5 = scmp.lt.s32.totalorder %s204_s23, %s204_s23 }
   0xd   :  { %p211_p6 = por %p210_p5, %p209_p4 }
   0xf   :  { %p212_p7 = pnand %p211_p6, %p205_p3 }
  0x11   :  { %215 = shalt.err (!%p212_p7)
}
  0x12   :  { %25 = dma.hbm_to_vmem [thread:$0]  %s332_s0, 64, %s23_s13, [#allocation3]  }
  0x13   :  { %s216_s28 = scalar_lea.hbm %s333_s1, 64 }
  0x14   :  { %p217_p8 = scmp.ne.s32.totalorder %s333_s1, %s216_s28  ;;  %p220_p9 = scmp.lt.u32.totalorder %s216_s28, %s333_s1 }
  0x16   :  { %p222_p10 = pnand %p220_p9, %p217_p8 }
  0x18   :  { %225 = shalt.err (!%p222_p10)
}
  0x19   :  { %s226_s6 = scalar_lea.vmem %s38_s15, 64  ;;  %p231_p12 = scmp.lt.s32.totalorder %s38_s15, %s38_s15 }
  0x1a   :  { %p227_p11 = scmp.ne.s32.totalorder %s38_s15, %s226_s6  ;;  %p232_p13 = scmp.lt.s32.totalorder %s226_s6, %s226_s6 }
  0x1c   :  { %p233_p0 = por %p232_p13, %p231_p12 }
  0x1e   :  { %p234_p1 = pnand %p233_p0, %p227_p11 }
  0x20   :  { %237 = shalt.err (!%p234_p1)
}
  0x21   :  { %40 = dma.hbm_to_vmem [thread:$0]  %s333_s1, 64, %s38_s15, [#allocation6]  }
  0x22   :  { %260 = dma.done.wait [#allocation3], 64  }
  0x23   :  { %261 = vsyncadd [#allocation3], 4294967232 }
  0x24   :  { %262 = dma.done.wait [#allocation6], 64  }
  0x25   :  { %263 = vsyncadd [#allocation6], 4294967232  ;;  %v268_v0 = vmov 0.0   ;;  %v91_v1 = vld [vmem:[#allocation2] sm:$0xf]  ;;  %s269_s8 = smov 96   ;;  %v131_v16 = vlaneseq }
  0x26   :  { %86 = vst [vmem:[#allocation7] sm:$0x1] %v268_v0  ;;  %v92_v2 = vld [vmem:[#allocation5] sm:$0xf]  ;;  %s270_s9 = smov 32   ;;  %s271_s10 = smov 64  }
  0x27   :  { %v94_v3 = vsub.f32 %v91_v1, %v92_v2  ;;  %vm96_vm0 = vcmask 257024   ;;  %v93_v12 = vld [vmem:[%s334_s2] sm:$0xf]  ;;  %vm119_vm1 = vcmask 7168   ;;  %vm121_vm2 = vcmask 15360   ;;  %s272_s2 = smov [#allocation7]  }
  0x28   :  { %v125_v13 = vmax.f32 %v93_v12, 1e-06  ;;  %vm123_vm3 = vcmask 23552   ;;  %v132_v22 = vshrl.u32 %v131_v16, 7  ;;  %vm141_vm5 = vcmask 27648   ;;  %s161_s12 = sshll.u32 %s272_s2, 4  ;;  %s162_s12 = int_to_ptr.vmem [resolvable:$true] %s161_s12 }
  0x29   :  { %v95_v4 = vmul.f32 %v94_v3, %v94_v3  ;;  %s238_s14 = scalar_lea.vmem %s162_s12, 16  ;;  %s242_s15 = scalar_lea.vmem %s162_s12, 32 }
  0x2a   :  { %190 = vlog2.f32 %v125_v13  ;;  %vm138_vm4 = vcmp.lt.s32.totalorder %v132_v22, 4  ;;  %p239_p2 = scmp.ne.s32.totalorder %s162_s12, %s238_s14  ;;  %p243_p3 = scmp.lt.s32.totalorder %s162_s12, %s162_s12 }
  0x2b   :  { %101 = vrot.lane.b32.xlu0 %v95_v4, %s269_s8  ;;  %113 = vrot.lane.b32.xlu1 %v95_v4, %s270_s9  ;;  %v97_v5 = vsel %vm96_vm0, %v95_v4, 0.0  ;;  %192 = vrcp.f32 %v125_v13  ;;  %p244_p4 = scmp.lt.s32.totalorder %s242_s15, %s238_s14 }
  0x2d   :  { %v140_v37 = vld [vmem:[#allocation7] sm:$0x1]  ;;  %p245_p5 = por %p244_p4, %p243_p3 }
  0x2f   :  { %107 = vrot.lane.b32.xlu0 %v95_v4, %s271_s10  ;;  %p246_p6 = pnand %p245_p5, %p239_p2 }
  0x34   :  { %v191_v17 = vpop.eup %190 }
  0x35   :  { %v193_v19 = vpop.eup %192  ;;  %v129_v24 = vmul.f32 0.6931472, %v191_v17 }
  0x4f   :  { %98 = vadd.xlane.f32.xlu1 %v97_v5 }
  0x9d   :  { %v102_v6 = vpop.permute.xlu0 %101  ;;  %v114_v7 = vpop.permute.xlu1 %113 }
  0x9e   :  { %v104_v8 = vsel %vm96_vm0, %v102_v6, 0.0  ;;  %v116_v9 = vsel %vm96_vm0, %v114_v7, 0.0 }
  0x9f   :  { %105 = vadd.xlane.f32.xlu0 %v104_v8  ;;  %117 = vadd.xlane.f32.xlu1 %v116_v9 }
  0xa1   :  { %v108_v10 = vpop.permute.xlu0 %107 }
  0xa2   :  { %v110_v11 = vsel %vm96_vm0, %v108_v10, 0.0 }
  0xa3   :  { %111 = vadd.xlane.f32.xlu0 %v110_v11 }
  0xdc   :  { %v99_v14 = vpop.xlane.xlu1 %98 }
 0x12c   :  { %v106_v15 = vpop.xlane.xlu0 %105  ;;  %v118_v18 = vpop.xlane.xlu1 %117 }
 0x12d   :  { %v120_v20 = vsel %vm119_vm1, %v99_v14, %v106_v15 }
 0x130   :  { %v112_v21 = vpop.xlane.xlu0 %111 }
 0x131   :  { %v122_v23 = vsel %vm121_vm2, %v120_v20, %v112_v21 }
 0x132   :  { %v124_v25 = vsel %vm123_vm3, %v122_v23, %v118_v18 }
 0x133   :  { %v127_v26 = vmul.f32 %v193_v19, %v124_v25 }
 0x135   :  { %v130_v27 = vadd.f32 %v129_v24, %v127_v26 }
 0x137   :  { %v139_v28 = vsel %vm138_vm4, %v130_v27, 0.0 }
 0x138   :  { %v142_v29 = vsel %vm141_vm5, %v139_v28, 0.0 }
 0x139   :  { %143 = vadd.xlane.f32.xlu0 %v142_v29 }
 0x1c6   :  { %v144_v30 = vpop.xlane.xlu0 %143 }
 0x1c7   :  { %v145_v31 = vrot.slane %v144_v30, 4 }
 0x1c9   :  { %v146_v32 = vadd.f32 %v145_v31, %v144_v30 }
 0x1cb   :  { %v147_v33 = vrot.slane %v146_v32, 2 }
 0x1cd   :  { %v148_v34 = vadd.f32 %v147_v33, %v146_v32 }
 0x1cf   :  { %v149_v35 = vrot.slane %v148_v34, 1 }
 0x1d1   :  { %v150_v36 = vadd.f32 %v149_v35, %v148_v34 }
 0x1d3   :  { %181 = vpush %v150_v36 }
 0x204   :  { %s182_s13 = spop %181 }
 0x205   :  { %v152_v38 = vstv %s182_s13 }
 0x206   :  { %v153_v39 = vadd.f32 %v152_v38, %v140_v37 }
 0x208   :  { %154 = vst [vmem:[#allocation7] sm:$0x1] %v153_v39 }
 0x209   :  { %249 = shalt.err (!%p246_p6)
}
 0x20a   :  { %s250_s18 = scalar_lea.hbm %s335_s3, 16 }
 0x20b   :  { %p251_p7 = scmp.ne.s32.totalorder %s335_s3, %s250_s18  ;;  %p254_p8 = scmp.lt.u32.totalorder %s250_s18, %s335_s3 }
 0x20d   :  { %p256_p9 = pnand %p254_p8, %p251_p7 }
 0x20f   :  { %259 = shalt.err (!%p256_p9)
}
 0x210   :  { %164 = dma.vmem_to_hbm [thread:$0]  %s162_s12, 16, %s335_s3, [#allocation4]  }
 0x211   :  { %264 = dma.done.wait [#allocation4], 16  }
 0x212   :  { %265 = vsyncadd [#allocation4], 4294967280 }
 0x213   :  { %168 = vsyncpa [#allocation3], 1 }
 0x214   :  { %169 = vsyncpa [#allocation6], 1 }
 0x215   :  { %170 = vsyncpa [#allocation4], 1 }

</bundles_post_ra>
